<compile_context>
chip_gen: v7x
topology: tpu7x:2x2x1
jax: 0.10.0
libtpu: 0.0.40
codegen_flags: <defaults>
</compile_context>

<pallas_src>
import numpy as np
import jax
import jax.numpy as jnp
from jax import lax
from jax.experimental import pallas as pl
from jax.experimental.pallas import tpu as pltpu

LRELU_SLOPE = 0.1

ROW_TARGET = 512                     # target MXU rows (TB*TH) per grid step
TH_MAX = 256                         # max H rows per tile (multiple of 16)
X_BLOCK_BUDGET = 10 * 1024 * 1024    # cap on one x block; x2 pipeline buffers fits v7x VMEM


def get_padding(kernel_size, dilation=1):
    return (kernel_size * dilation - dilation) // 2


def _cdiv(a, b):
    return -(-a // b)


def _round_up(a, m):
    return _cdiv(a, m) * m


def _largest_divisor_leq(n, cap):
    cap = max(1, min(n, cap))
    for d in range(cap, 0, -1):
        if n % d == 0:
            return d
    return 1


def _pick_c_tile(c):
    for cand in (256, 128):
        if c % cand == 0:
            return cand
    return c


def conv2d_p_layer(x, w, bias, stride, pad, apply_lrelu, compute_dtype=jnp.bfloat16):
    """One Conv2d((K,1),(stride,1),padding=(pad,0)) [+ LeakyReLU] layer.

    x    : (N, H, C_in)           activations
    w    : (K, C_in, C_out) f32   (torch weight[co, ci, k, 0] == w[k, ci, co])
    bias : (C_out,) f32
    returns (N, H_out, C_out) in compute_dtype (f32 accumulation inside the kernel).
    """
    N, H, C_in = x.shape
    K, _, C_out = w.shape
    S = int(stride)
    H_pad = H + 2 * pad
    H_out = (H_pad - K) // S + 1

    # conv_post (C_out=1): pad output channels to 128 -> lane-dense matmul columns / unmasked
    # stores; sliced back to C_out at the end.
    C_eff = C_out
    if C_out % 128 != 0:
        C_eff = _round_up(C_out, 128)
        w = jnp.pad(w, ((0, 0), (0, 0), (0, C_eff - C_out)))
        bias = jnp.pad(bias, (0, C_eff - C_out))

    TC = _pick_c_tile(C_eff)          # 256 for 512/1024 ch layers, else 128
    n_c = C_eff // TC

    # H tiling; TH multiple of 16 keeps the (TB,TH,C)<->(TB*TH,C) reshapes tile-aligned (bf16).
    n_h = _cdiv(H_out, TH_MAX)
    TH = _round_up(_cdiv(H_out, n_h), 16)
    n_h = _cdiv(H_out, TH)
    H_out_up = n_h * TH               # output allocated padded -> no partial blocks

    halo = (K - 1) // S               # extra phase rows needed by the last tap
    Hq = H_out_up + halo
    tgt = Hq * S

    itemsize = jnp.dtype(compute_dtype).itemsize
    x_strip_bytes = S * Hq * C_in * itemsize
    TB = _largest_divisor_leq(
        N, min(max(1, ROW_TARGET // TH), max(1, X_BLOCK_BUDGET // max(1, x_strip_bytes))))
    n_n = N // TB
    rows = TB * TH                    # MXU rows per grid step

    # Conv zero-pad on H; the phase-split tail pad / truncation is folded into the same op.
    tail = tgt - (H + pad)
    if tail >= 0:
        xp = jnp.pad(x, ((0, 0), (pad, tail), (0, 0)))
    else:
        xp = jnp.pad(x, ((0, 0), (pad, 0), (0, 0)))[:, :tgt, :]
    # Phase split: x_ph[n, p, q, c] == xp[n, q*S + p, c]; output row h, tap k reads phase k%S at
    # row h + k//S -> only contiguous pl.ds slices inside the kernel.
    if S == 1:
        x_ph = xp.reshape(N, 1, Hq, C_in).astype(compute_dtype)
    else:
        x_ph = xp.reshape(N, Hq, S, C_in).transpose(0, 2, 1, 3).astype(compute_dtype)

    # Fuse the K taps into one contraction when C_in is small and lane-aligned (the 128->512
    # layer); otherwise accumulate per tap into an f32 VMEM scratch (C_in >= 512 layers).
    use_im2col = (C_in % 128 == 0) and (K * C_in <= 1024)
    if use_im2col:
        w_k = w.reshape(K * C_in, C_eff).astype(compute_dtype)
    else:
        w_k = w.astype(compute_dtype)
    b2 = bias.reshape(1, C_eff).astype(jnp.float32)

    # Grid order: pick the outer axis (C_out tiles vs N tiles) minimising redundant HBM refetch,
    # but keep the leading parallel axis > 1 so v7x megacore can shard it.
    w_bytes = K * C_in * C_eff * itemsize
    a_bytes = N * S * Hq * C_in * itemsize
    out_bytes = N * H_out_up * C_eff * itemsize
    jc_outer = (w_bytes + n_c * a_bytes) <= (n_n * w_bytes + a_bytes)
    if jc_outer and n_c == 1 and n_n > 1:
        jc_outer = False
    if (not jc_outer) and n_n == 1 and n_c > 1:
        jc_outer = True

    if jc_outer:
        grid = (n_c, n_n, n_h)
        unpack = lambda a, b, c: (a, b, c)      # -> (jc, jn, jh)
    else:
        grid = (n_n, n_c, n_h)
        unpack = lambda a, b, c: (b, a, c)      # -> (jc, jn, jh)

    def x_map(a, b, c):
        jc, jn, jh = unpack(a, b, c)
        return (jn, 0, 0, 0)

    def b_map(a, b, c):
        jc, jn, jh = unpack(a, b, c)
        return (0, jc)

    def o_map(a, b, c):
        jc, jn, jh = unpack(a, b, c)
        return (jn, jh, jc)

    if use_im2col:
        def w_map(a, b, c):
            jc, jn, jh = unpack(a, b, c)
            return (0, jc)
        w_spec = pl.BlockSpec((K * C_in, TC), w_map)
        scratch_shapes = []
    else:
        def w_map(a, b, c):
            jc, jn, jh = unpack(a, b, c)
            return (0, 0, jc)
        w_spec = pl.BlockSpec((K, C_in, TC), w_map)
        scratch_shapes = [pltpu.VMEM((rows, TC), jnp.float32)]

    def kernel(x_ref, w_ref, b_ref, o_ref, *scratch):
        # x_ref: (TB, S, Hq, C_in)   w_ref: (K*C_in, TC) | (K, C_in, TC)
        # b_ref: (1, TC) f32         o_ref: (TB, TH, TC)
        base = pl.multiple_of(pl.program_id(2) * TH, 16)
        if use_im2col:
            taps = [x_ref[:, k % S, pl.ds(base + k // S, TH), :] for k in range(K)]
            lhs = jnp.concatenate(taps, axis=-1).reshape(rows, K * C_in)
            acc = jnp.dot(lhs, w_ref[...], preferred_element_type=jnp.float32)
        else:
            acc_ref, = scratch
            for k in range(K):                  # K in {3,5}: tiny static unroll
                xs = x_ref[:, k % S, pl.ds(base + k // S, TH), :].reshape(rows, C_in)
                p = jnp.dot(xs, w_ref[k], preferred_element_type=jnp.float32)
                if k == 0:
                    acc_ref[...] = p            # f32 accumulation streamed via VMEM scratch
                else:
                    acc_ref[...] += p
            acc = acc_ref[...]
        acc = acc + b_ref[...]                  # bias add hoisted to the end (f32)
        if apply_lrelu:
            acc = jnp.maximum(acc, LRELU_SLOPE * acc)   # vmul+vmax, no cmp/select
        o_ref[...] = acc.reshape(TB, TH, TC).astype(o_ref.dtype)   # lane-dense slab store

    out = pl.pallas_call(
        kernel,
        out_shape=jax.ShapeDtypeStruct((N, H_out_up, C_eff), compute_dtype),
        grid_spec=pltpu.PrefetchScalarGridSpec(
            num_scalar_prefetch=0,
            grid=grid,
            in_specs=[
                pl.BlockSpec((TB, S, Hq, C_in), x_map),
                w_spec,
                pl.BlockSpec((1, TC), b_map),
            ],
            out_specs=pl.BlockSpec((TB, TH, TC), o_map),
            scratch_shapes=scratch_shapes,
        ),
        compiler_params=pltpu.CompilerParams(
            dimension_semantics=("parallel", "parallel", "parallel"),
            vmem_limit_bytes=48 * 1024 * 1024,   # within v7x's 64 MiB physical VMEM
        ),
        cost_estimate=pl.CostEstimate(
            flops=2 * K * C_in * C_eff * N * H_out_up,
            transcendentals=0,
            bytes_accessed=int(a_bytes + w_bytes + 4 * C_eff + out_bytes),
        ),
    )(x_ph, w_k, b2)

    if H_out_up != H_out or C_eff != C_out:
        out = out[:, :H_out, :C_out]
    return out


def conv_first_layer(x, w, bias, stride, pad):
    """Layer 0 (C_in=1 -> 32 ch): plain f32 lax.conv + LeakyReLU.

    ~0.1% of total FLOPs; in Pallas its loads are 1-lane-dense and its stores 32-lane masked,
    so the kernel launch + relayouts cost more than they save.
    """
    y = lax.conv_general_dilated(
        x, w, window_strides=(stride,), padding=((pad, pad),),
        dimension_numbers=("NHC", "HIO", "NHC"),
        precision=lax.Precision.HIGHEST)
    y = y + bias.reshape(1, 1, -1)
    return jnp.maximum(y, LRELU_SLOPE * y)


def discriminator_p_forward(x, params, period, compute_dtype=jnp.bfloat16):
    """x: (b, 1, t) f32 -> (sigmoid-flattened logits (b, H_f*period), fmap list in NCHW f32)."""
    b, c, t = x.shape
    if t % period != 0:
        n_pad = period - t % period
        x = jnp.pad(x, ((0, 0), (0, 0), (0, n_pad)), mode="reflect")
        t = t + n_pad
    H = t // period
    x4 = x.reshape(b, c, H, period)                                   # NCHW, W = period
    xk = jnp.transpose(x4, (0, 3, 2, 1)).reshape(b * period, H, c)    # -> (N, H, C)

    fmap = []
    for i, (w, bias, stride, pad) in enumerate(params):
        is_post = i == len(params) - 1
        if i == 0:
            xk = conv_first_layer(xk, w, bias, stride, pad)           # f32, plain JAX
        else:
            xk = conv2d_p_layer(xk, w, bias, stride, pad,
                                apply_lrelu=not is_post, compute_dtype=compute_dtype)
        N, Ho, Co = xk.shape
        fmap.append(jnp.transpose(xk.reshape(b, period, Ho, Co), (0, 3, 2, 1))
                    .astype(jnp.float32))                             # NCHW fmap

    out = jax.nn.sigmoid(fmap[-1].reshape(b, -1))   # torch.flatten(x, 1, -1) order
    return out, fmap


def ref_forward(x, params, period):
    """Pure-JAX reference (lax.conv) mirroring the PyTorch forward."""
    b, c, t = x.shape
    if t % period != 0:
        x = jnp.pad(x, ((0, 0), (0, 0), (0, period - t % period)), mode="reflect")
        t = x.shape[-1]
    xr = x.reshape(b, c, t // period, period)
    fmap = []
    for i, (w, bias, stride, pad) in enumerate(params):
        K, ci, co = w.shape
        w_oihw = jnp.transpose(w, (2, 1, 0))[:, :, :, None]  # (co, ci, K, 1)
        xr = jax.lax.conv_general_dilated(
            xr, w_oihw, (stride, 1), ((pad, pad), (0, 0)),
            dimension_numbers=("NCHW", "OIHW", "NCHW"),
            precision=jax.lax.Precision.HIGHEST)
        xr = xr + bias.reshape(1, co, 1, 1)
        if i != len(params) - 1:
            xr = jnp.where(xr >= 0, xr, LRELU_SLOPE * xr)
        fmap.append(xr)
    return jax.nn.sigmoid(xr.reshape(b, -1)), fmap


def make_params(key, kernel_size=5, stride=3):
    pad = get_padding(5, 1)
    cfgs = [
        (1, 32, kernel_size, stride, pad),
        (32, 128, kernel_size, stride, pad),
        (128, 512, kernel_size, stride, pad),
        (512, 1024, kernel_size, stride, pad),
        (1024, 1024, kernel_size, 1, 2),
        (1024, 1, 3, 1, 1),  # conv_post
    ]
    params = []
    for (ci, co, k, s, p) in cfgs:
        key, wk, bk = jax.random.split(key, 3)
        scale = 1.0 / np.sqrt(ci * k)
        w = jax.random.normal(wk, (k, ci, co), dtype=jnp.float32) * scale
        bias = jax.random.normal(bk, (co,), dtype=jnp.float32) * 0.1
        params.append((w, bias, s, p))
    return params


if __name__ == "__main__":
    key = jax.random.PRNGKey(0)
    period = 2
    b, c, t = 2, 1, 201  # t not divisible by period -> exercises the reflect-pad path

    key, xkey, pkey = jax.random.split(key, 3)
    x = jax.random.normal(xkey, (b, c, t), dtype=jnp.float32)
    params = make_params(pkey)

    out_ref, fmap_ref = ref_forward(x, params, period)

    # f32 path (checked tight against a HIGHEST-precision lax.conv reference)
    out, fmap = discriminator_p_forward(x, params, period, compute_dtype=jnp.float32)
    out = jax.block_until_ready(out)
    fmap = [jax.block_until_ready(f) for f in fmap]
    assert out.shape == out_ref.shape, (out.shape, out_ref.shape)
    np.testing.assert_allclose(np.asarray(out), np.asarray(out_ref), rtol=2e-3, atol=2e-3)
    for f, fr in zip(fmap, fmap_ref):
        assert f.shape == fr.shape, (f.shape, fr.shape)
        np.testing.assert_allclose(np.asarray(f), np.asarray(fr), rtol=2e-3, atol=2e-3)

    # default path: bf16 MXU operands (v5e/v6e/v7x), f32 accumulate / bias / LeakyReLU
    out_bf16, _ = discriminator_p_forward(x, params, period)
    out_bf16 = jax.block_until_ready(out_bf16)
    np.testing.assert_allclose(np.asarray(out_bf16), np.asarray(out_ref), atol=6e-2)

    print("KERNEL_OK")
</pallas_src>

<mosaic_0001>
module attributes {stable_mosaic.version = 11 : i64} {
  func.func @kernel(%arg0: i32, %arg1: i32, %arg2: i32, %arg3: memref<4x3x17x32xf32, #tpu.memory_space<vmem>>, %arg4: memref<5x32x128xf32, #tpu.memory_space<vmem>>, %arg5: memref<1x128xf32, #tpu.memory_space<vmem>>, %arg6: memref<4x16x128xf32, #tpu.memory_space<vmem>>, %arg7: memref<64x128xf32, #tpu.memory_space<vmem>>) attributes {dimension_semantics = [#tpu.dimension_semantics<parallel>, #tpu.dimension_semantics<parallel>, #tpu.dimension_semantics<parallel>], iteration_bounds = array<i64: 1, 1, 1>, scalar_prefetch = 0 : i64, scratch_operands = 1 : i64, tpu.core_type = #tpu.core_type<tc>, window_params = [{transform_indices = @transform_0, window_bounds = array<i64: 4, 3, 17, 32>}, {transform_indices = @transform_1, window_bounds = array<i64: 5, 32, 128>}, {transform_indices = @transform_2, window_bounds = array<i64: 1, 128>}, {transform_indices = @transform_3, window_bounds = array<i64: 4, 16, 128>}]} {
    %c16_i32 = arith.constant 16 : i32
    %0 = arith.muli %arg2, %c16_i32 : i32
    %1 = tpu.assume_multiple %0, 16 : i32
    %c0_i32 = arith.constant 0 : i32
    %2 = arith.addi %1, %c0_i32 : i32
    %c0 = arith.constant 0 : index
    %c0_0 = arith.constant 0 : index
    %3 = arith.index_cast %2 : i32 to index
    %c0_1 = arith.constant 0 : index
    %4 = vector.load %arg3[%c0, %c0_0, %3, %c0_1] : memref<4x3x17x32xf32, #tpu.memory_space<vmem>>, vector<4x1x16x32xf32>
    %5 = vector.shape_cast %4 : vector<4x1x16x32xf32> to vector<4x16x32xf32>
    %6 = vector.shape_cast %5 : vector<4x16x32xf32> to vector<64x32xf32>
    %c0_2 = arith.constant 0 : index
    %c0_3 = arith.constant 0 : index
    %c0_4 = arith.constant 0 : index
    %7 = vector.load %arg4[%c0_2, %c0_3, %c0_4] : memref<5x32x128xf32, #tpu.memory_space<vmem>>, vector<1x32x128xf32>
    %8 = vector.shape_cast %7 : vector<1x32x128xf32> to vector<32x128xf32>
    %cst = arith.constant dense<0.000000e+00> : vector<64x128xf32>
    %9 = tpu.matmul %6, %8, %cst {dimension_numbers = #tpu.dot_dimension_numbers<[1], [0], [0], [1], [0, 0, 1, 1], [], []>} : vector<64x32xf32>, vector<32x128xf32>, vector<64x128xf32> -> vector<64x128xf32>
    %c0_5 = arith.constant 0 : index
    %c0_6 = arith.constant 0 : index
    %10 = vector.load %arg7[%c0_5, %c0_6] : memref<64x128xf32, #tpu.memory_space<vmem>>, vector<64x128xf32>
    tpu.vector_store %arg7[%c0_5, %c0_6], %9 {strides = array<i32>} : memref<64x128xf32, #tpu.memory_space<vmem>>, vector<64x128xf32>,
    %c0_i32_7 = arith.constant 0 : i32
    %11 = arith.addi %1, %c0_i32_7 : i32
    %c0_8 = arith.constant 0 : index
    %c1 = arith.constant 1 : index
    %12 = arith.index_cast %11 : i32 to index
    %c0_9 = arith.constant 0 : index
    %13 = vector.load %arg3[%c0_8, %c1, %12, %c0_9] : memref<4x3x17x32xf32, #tpu.memory_space<vmem>>, vector<4x1x16x32xf32>
    %14 = vector.shape_cast %13 : vector<4x1x16x32xf32> to vector<4x16x32xf32>
    %15 = vector.shape_cast %14 : vector<4x16x32xf32> to vector<64x32xf32>
    %c1_10 = arith.constant 1 : index
    %c0_11 = arith.constant 0 : index
    %c0_12 = arith.constant 0 : index
    %16 = vector.load %arg4[%c1_10, %c0_11, %c0_12] : memref<5x32x128xf32, #tpu.memory_space<vmem>>, vector<1x32x128xf32>
    %17 = vector.shape_cast %16 : vector<1x32x128xf32> to vector<32x128xf32>
    %cst_13 = arith.constant dense<0.000000e+00> : vector<64x128xf32>
    %18 = tpu.matmul %15, %17, %cst_13 {dimension_numbers = #tpu.dot_dimension_numbers<[1], [0], [0], [1], [0, 0, 1, 1], [], []>} : vector<64x32xf32>, vector<32x128xf32>, vector<64x128xf32> -> vector<64x128xf32>
    %c0_14 = arith.constant 0 : index
    %c0_15 = arith.constant 0 : index
    %19 = vector.load %arg7[%c0_14, %c0_15] : memref<64x128xf32, #tpu.memory_space<vmem>>, vector<64x128xf32>
    %20 = arith.addf %19, %18 : vector<64x128xf32>
    %c0_16 = arith.constant 0 : index
    %c0_17 = arith.constant 0 : index
    %21 = vector.load %arg7[%c0_16, %c0_17] : memref<64x128xf32, #tpu.memory_space<vmem>>, vector<64x128xf32>
    tpu.vector_store %arg7[%c0_16, %c0_17], %20 {strides = array<i32>} : memref<64x128xf32, #tpu.memory_space<vmem>>, vector<64x128xf32>,
    %c0_i32_18 = arith.constant 0 : i32
    %22 = arith.addi %1, %c0_i32_18 : i32
    %c0_19 = arith.constant 0 : index
    %c2 = arith.constant 2 : index
    %23 = arith.index_cast %22 : i32 to index
    %c0_20 = arith.constant 0 : index
    %24 = vector.load %arg3[%c0_19, %c2, %23, %c0_20] : memref<4x3x17x32xf32, #tpu.memory_space<vmem>>, vector<4x1x16x32xf32>
    %25 = vector.shape_cast %24 : vector<4x1x16x32xf32> to vector<4x16x32xf32>
    %26 = vector.shape_cast %25 : vector<4x16x32xf32> to vector<64x32xf32>
    %c2_21 = arith.constant 2 : index
    %c0_22 = arith.constant 0 : index
    %c0_23 = arith.constant 0 : index
    %27 = vector.load %arg4[%c2_21, %c0_22, %c0_23] : memref<5x32x128xf32, #tpu.memory_space<vmem>>, vector<1x32x128xf32>
    %28 = vector.shape_cast %27 : vector<1x32x128xf32> to vector<32x128xf32>
    %cst_24 = arith.constant dense<0.000000e+00> : vector<64x128xf32>
    %29 = tpu.matmul %26, %28, %cst_24 {dimension_numbers = #tpu.dot_dimension_numbers<[1], [0], [0], [1], [0, 0, 1, 1], [], []>} : vector<64x32xf32>, vector<32x128xf32>, vector<64x128xf32> -> vector<64x128xf32>
    %c0_25 = arith.constant 0 : index
    %c0_26 = arith.constant 0 : index
    %30 = vector.load %arg7[%c0_25, %c0_26] : memref<64x128xf32, #tpu.memory_space<vmem>>, vector<64x128xf32>
    %31 = arith.addf %30, %29 : vector<64x128xf32>
    %c0_27 = arith.constant 0 : index
    %c0_28 = arith.constant 0 : index
    %32 = vector.load %arg7[%c0_27, %c0_28] : memref<64x128xf32, #tpu.memory_space<vmem>>, vector<64x128xf32>
    tpu.vector_store %arg7[%c0_27, %c0_28], %31 {strides = array<i32>} : memref<64x128xf32, #tpu.memory_space<vmem>>, vector<64x128xf32>,
    %c1_i32 = arith.constant 1 : i32
    %33 = arith.addi %1, %c1_i32 : i32
    %c0_29 = arith.constant 0 : index
    %c0_30 = arith.constant 0 : index
    %34 = arith.index_cast %33 : i32 to index
    %c0_31 = arith.constant 0 : index
    %35 = vector.load %arg3[%c0_29, %c0_30, %34, %c0_31] : memref<4x3x17x32xf32, #tpu.memory_space<vmem>>, vector<4x1x16x32xf32>
    %36 = vector.shape_cast %35 : vector<4x1x16x32xf32> to vector<4x16x32xf32>
    %37 = vector.shape_cast %36 : vector<4x16x32xf32> to vector<64x32xf32>
    %c3 = arith.constant 3 : index
    %c0_32 = arith.constant 0 : index
    %c0_33 = arith.constant 0 : index
    %38 = vector.load %arg4[%c3, %c0_32, %c0_33] : memref<5x32x128xf32, #tpu.memory_space<vmem>>, vector<1x32x128xf32>
    %39 = vector.shape_cast %38 : vector<1x32x128xf32> to vector<32x128xf32>
    %cst_34 = arith.constant dense<0.000000e+00> : vector<64x128xf32>
    %40 = tpu.matmul %37, %39, %cst_34 {dimension_numbers = #tpu.dot_dimension_numbers<[1], [0], [0], [1], [0, 0, 1, 1], [], []>} : vector<64x32xf32>, vector<32x128xf32>, vector<64x128xf32> -> vector<64x128xf32>
    %c0_35 = arith.constant 0 : index
    %c0_36 = arith.constant 0 : index
    %41 = vector.load %arg7[%c0_35, %c0_36] : memref<64x128xf32, #tpu.memory_space<vmem>>, vector<64x128xf32>
    %42 = arith.addf %41, %40 : vector<64x128xf32>
    %c0_37 = arith.constant 0 : index
    %c0_38 = arith.constant 0 : index
    %43 = vector.load %arg7[%c0_37, %c0_38] : memref<64x128xf32, #tpu.memory_space<vmem>>, vector<64x128xf32>
    tpu.vector_store %arg7[%c0_37, %c0_38], %42 {strides = array<i32>} : memref<64x128xf32, #tpu.memory_space<vmem>>, vector<64x128xf32>,
    %c1_i32_39 = arith.constant 1 : i32
    %44 = arith.addi %1, %c1_i32_39 : i32
    %c0_40 = arith.constant 0 : index
    %c1_41 = arith.constant 1 : index
    %45 = arith.index_cast %44 : i32 to index
    %c0_42 = arith.constant 0 : index
    %46 = vector.load %arg3[%c0_40, %c1_41, %45, %c0_42] : memref<4x3x17x32xf32, #tpu.memory_space<vmem>>, vector<4x1x16x32xf32>
    %47 = vector.shape_cast %46 : vector<4x1x16x32xf32> to vector<4x16x32xf32>
    %48 = vector.shape_cast %47 : vector<4x16x32xf32> to vector<64x32xf32>
    %c4 = arith.constant 4 : index
    %c0_43 = arith.constant 0 : index
    %c0_44 = arith.constant 0 : index
    %49 = vector.load %arg4[%c4, %c0_43, %c0_44] : memref<5x32x128xf32, #tpu.memory_space<vmem>>, vector<1x32x128xf32>
    %50 = vector.shape_cast %49 : vector<1x32x128xf32> to vector<32x128xf32>
    %cst_45 = arith.constant dense<0.000000e+00> : vector<64x128xf32>
    %51 = tpu.matmul %48, %50, %cst_45 {dimension_numbers = #tpu.dot_dimension_numbers<[1], [0], [0], [1], [0, 0, 1, 1], [], []>} : vector<64x32xf32>, vector<32x128xf32>, vector<64x128xf32> -> vector<64x128xf32>
    %c0_46 = arith.constant 0 : index
    %c0_47 = arith.constant 0 : index
    %52 = vector.load %arg7[%c0_46, %c0_47] : memref<64x128xf32, #tpu.memory_space<vmem>>, vector<64x128xf32>
    %53 = arith.addf %52, %51 : vector<64x128xf32>
    %c0_48 = arith.constant 0 : index
    %c0_49 = arith.constant 0 : index
    %54 = vector.load %arg7[%c0_48, %c0_49] : memref<64x128xf32, #tpu.memory_space<vmem>>, vector<64x128xf32>
    tpu.vector_store %arg7[%c0_48, %c0_49], %53 {strides = array<i32>} : memref<64x128xf32, #tpu.memory_space<vmem>>, vector<64x128xf32>,
    %c0_50 = arith.constant 0 : index
    %c0_51 = arith.constant 0 : index
    %55 = vector.load %arg7[%c0_50, %c0_51] : memref<64x128xf32, #tpu.memory_space<vmem>>, vector<64x128xf32>
    %c0_52 = arith.constant 0 : index
    %c0_53 = arith.constant 0 : index
    %56 = vector.load %arg5[%c0_52, %c0_53] : memref<1x128xf32, #tpu.memory_space<vmem>>, vector<1x128xf32>
    %57 = vector.broadcast %56 : vector<1x128xf32> to vector<64x128xf32>
    %58 = arith.addf %55, %57 : vector<64x128xf32>
    %cst_54 = arith.constant 1.000000e-01 : f32
    %59 = vector.broadcast %cst_54 : f32 to vector<64x128xf32>
    %60 = arith.mulf %59, %58 : vector<64x128xf32>
    %61 = arith.maximumf %58, %60 : vector<64x128xf32>
    %62 = vector.shape_cast %61 : vector<64x128xf32> to vector<4x16x128xf32>
    %c0_55 = arith.constant 0 : index
    %c0_56 = arith.constant 0 : index
    %c0_57 = arith.constant 0 : index
    %63 = vector.load %arg6[%c0_55, %c0_56, %c0_57] : memref<4x16x128xf32, #tpu.memory_space<vmem>>, vector<4x16x128xf32>
    tpu.vector_store %arg6[%c0_55, %c0_56, %c0_57], %62 {strides = array<i32>} : memref<4x16x128xf32, #tpu.memory_space<vmem>>, vector<4x16x128xf32>,
    return
  }
  func.func @transform_0(%arg0: i32, %arg1: i32, %arg2: i32) -> (i32, i32, i32, i32) {
    %c0_i32 = arith.constant 0 : i32
    %c0_i32_0 = arith.constant 0 : i32
    %c0_i32_1 = arith.constant 0 : i32
    %c0_i32_2 = arith.constant 0 : i32
    return %arg1, %c0_i32, %c0_i32_0, %c0_i32_1 : i32, i32, i32, i32
  }
  func.func @transform_1(%arg0: i32, %arg1: i32, %arg2: i32) -> (i32, i32, i32) {
    %c0_i32 = arith.constant 0 : i32
    %c0_i32_0 = arith.constant 0 : i32
    %c0_i32_1 = arith.constant 0 : i32
    return %c0_i32, %c0_i32_0, %arg0 : i32, i32, i32
  }
  func.func @transform_2(%arg0: i32, %arg1: i32, %arg2: i32) -> (i32, i32) {
    %c0_i32 = arith.constant 0 : i32
    %c0_i32_0 = arith.constant 0 : i32
    return %c0_i32, %arg0 : i32, i32
  }
  func.func @transform_3(%arg0: i32, %arg1: i32, %arg2: i32) -> (i32, i32, i32) {
    %c0_i32 = arith.constant 0 : i32
    return %arg1, %arg2, %arg0 : i32, i32, i32
  }
}

</mosaic_0001>

<bundles_post_ra>
// kernel: tpu_custom_call.1
= control target key start
LH: loop header
LB: loop body
LE: loop exit
PB: predicated region body
PF: predicated region fallthrough
CT: control target
= control target key end

     0   :  { %vm29_vm0 = vcmask 261120   ;;  %s1528_s0 = inlined_call_operand.vmem [shape: f32[4,3,17,32], index: 0, kind: input, shape index: {}]   ;;  %s1529_s1 = inlined_call_operand.vmem [shape: f32[5,32,128], index: 1, kind: input, shape index: {}]   ;;  %s1530_s2 = inlined_call_operand.vmem [shape: f32[1,128], index: 2, kind: input, shape index: {}]   ;;  %s1531_s3 = inlined_call_operand.hbm [shape: f32[4,16,128], index: 3, kind: output, shape index: {}]  }
   0x1   :  { %v25_v0 = vld [vmem:[%s1529_s1] sm:$0xff]  ;;  %v26_v1 = vld [vmem:[%s1529_s1 + $0x8] sm:$0xff]  ;;  %v27_v5 = vld [vmem:[%s1529_s1 + $0x10] sm:$0xff] }
   0x2   :  { %v942_v2 = vld [vmem:[%s1529_s1 + $0x40] sm:$0xff]  ;;  %v1155_v3 = vpack.c.bf16 %v26_v1, %v25_v0  ;;  %v943_v4 = vld [vmem:[%s1529_s1 + $0x48] sm:$0xff]  ;;  %v28_v6 = vld [vmem:[%s1529_s1 + $0x18] sm:$0xff] }
   0x3   :  { %v1299_v7 = vpack.c.bf16 %v943_v4, %v942_v2  ;;  %v1159_v8 = vpack.c.bf16 %v28_v6, %v27_v5  ;;  %v944_v9 = vld [vmem:[%s1529_s1 + $0x50] sm:$0xff]  ;;  %v945_v10 = vld [vmem:[%s1529_s1 + $0x58] sm:$0xff]  ;;  %v17_v11 = vld [vmem:[%s1528_s0] sm:$0xff] }
   0x4   :  { %1156 = vmatprep.subr.bf16.mxu1 %v1155_v3  ;;  %v1310_v12 = vpack.c.bf16 %v945_v10, %v944_v9  ;;  %1063 = vmatprep.mubr.msk.f32.mxu1 %vm29_vm0, %v17_v11  ;;  %v934_v13 = vld [vmem:[%s1528_s0 + $0x30] sm:$0xff]  ;;  %v922_v14 = vld [vmem:[%s1529_s1 + $0x20] sm:$0xff]  ;;  %v923_v15 = vld [vmem:[%s1529_s1 + $0x28] sm:$0xff] }
   0x5   :  { %1172 = vmatprep.subr.bf16.mxu0 %v1299_v7  ;;  %1158 = vmatpush3.bf16.msra.mxu1 %v1155_v3  ;;  %v962_v16 = vld [vmem:[%s1529_s1 + $0x60] sm:$0xff]  ;;  %v1163_v17 = vpack.c.bf16 %v923_v15, %v922_v14  ;;  %v963_v18 = vld [vmem:[%s1529_s1 + $0x68] sm:$0xff]  ;;  %v964_v20 = vld [vmem:[%s1529_s1 + $0x70] sm:$0xff] }
   0x6   :  { %1174 = vmatpush3.bf16.msra.mxu0 %v1299_v7  ;;  %1160 = vmatprep.subr.bf16.mxu1 %v1159_v8  ;;  %v1179_v19 = vpack.c.bf16 %v963_v18, %v962_v16  ;;  %v965_v21 = vld [vmem:[%s1529_s1 + $0x78] sm:$0xff]  ;;  %v18_v22 = vld [vmem:[%s1528_s0 + $0x8] sm:$0xff]  ;;  %v924_v23 = vld [vmem:[%s1529_s1 + $0x30] sm:$0xff] }
   0x7   :  { %1176 = vmatprep.subr.bf16.mxu0 %v1310_v12  ;;  %1103 = vmatprep.mubr.msk.f32.mxu0 %vm29_vm0, %v934_v13  ;;  %v925_v24 = vld [vmem:[%s1529_s1 + $0x38] sm:$0xff]  ;;  %v19_v26 = vld [vmem:[%s1528_s0 + $0x48] sm:$0xff]  ;;  %v1183_v27 = vpack.c.bf16 %v965_v21, %v964_v20  ;;  %v982_v30 = vld [vmem:[%s1529_s1 + $0x80] sm:$0xff] }
   0x8   :  { %v935_v25 = vld [vmem:[%s1528_s0 + $0x38] sm:$0xff]  ;;  %v1167_v29 = vpack.c.bf16 %v925_v24, %v924_v23  ;;  %v983_v31 = vld [vmem:[%s1529_s1 + $0x88] sm:$0xff]  ;;  %v20_v32 = vld [vmem:[%s1528_s0 + $0x50] sm:$0xff] }
   0x9   :  { %1162 = vmatpush3.bf16.msra.mxu1 %v1159_v8  ;;  %v936_v28 = vld [vmem:[%s1528_s0 + $0x78] sm:$0xff]  ;;  %v937_v33 = vld [vmem:[%s1528_s0 + $0x80] sm:$0xff]  ;;  %v21_v34 = vld [vmem:[%s1528_s0 + $0x90] sm:$0xff]  ;;  %v1187_v36 = vpack.c.bf16 %v983_v31, %v982_v30 }
   0xa   :  { %1178 = vmatpush3.bf16.msra.mxu0 %v1310_v12  ;;  %1164 = vmatprep.subr.bf16.mxu1 %v1163_v17  ;;  %v954_v35 = vld [vmem:[%s1528_s0 + $0x1] sm:$0xff]  ;;  %v984_v37 = vld [vmem:[%s1529_s1 + $0x90] sm:$0xff]  ;;  %v985_v38 = vld [vmem:[%s1529_s1 + $0x98] sm:$0xff] }
   0xb   :  { %1180 = vmatprep.subr.bf16.mxu0 %v1179_v19  ;;  %v22_v39 = vld [vmem:[%s1528_s0 + $0x98] sm:$0xff]  ;;  %v955_v40 = vld [vmem:[%s1528_s0 + $0x9] sm:$0xff]  ;;  %v1191_v43 = vpack.c.bf16 %v985_v38, %v984_v37  ;;  %v24_v44 = vld [vmem:[%s1528_s0 + $0xe0] sm:$0xff] }
   0xc   :  { %1064 = vmatmul.mubr.msk.f32.vlgmr.msra.gmra.mrb[0].mxu1 %vm29_vm0, %v18_v22  ;;  %v23_v41 = vld [vmem:[%s1528_s0 + $0xd8] sm:$0xff]  ;;  %v956_v42 = vld [vmem:[%s1528_s0 + $0x49] sm:$0xff] }
   0xd   :  { %1104 = vmatmul.mubr.msk.f32.vlgmr.msra.gmra.mrb[0].mxu0 %vm29_vm0, %v935_v25  ;;  %1166 = vmatpush3.bf16.msra.mxu1 %v1163_v17 }
   0xe   :  { %1182 = vmatpush3.bf16.msra.mxu0 %v1179_v19  ;;  %1066 = vmatprep.mubr.msk.f32.mxu1 %vm29_vm0, %v19_v26 }
   0xf   :  { %1106 = vmatprep.mubr.msk.f32.mxu0 %vm29_vm0, %v936_v28  ;;  %1184 = vmatprep.subr.bf16.mxu0 %v1183_v27 }
  0x10   :  { %1067 = vmatmul.mubr.msk.f32.gmra.mrb[2].mxu1 %vm29_vm0, %v20_v32  ;;  %1168 = vmatprep.subr.bf16.mxu1 %v1167_v29 }
  0x11   :  { %1107 = vmatmul.mubr.msk.f32.gmra.mrb[2].mxu0 %vm29_vm0, %v937_v33  ;;  %1069 = vmatprep.mubr.msk.f32.mxu1 %vm29_vm0, %v21_v34 }
  0x12   :  { %1186 = vmatpush3.bf16.msra.mxu0 %v1183_v27  ;;  %1123 = vmatprep.mubr.msk.f32.mxu0 %vm29_vm0, %v954_v35 }
  0x13   :  { %1188 = vmatprep.subr.bf16.mxu0 %v1187_v36  ;;  %1170 = vmatpush3.bf16.msra.mxu1 %v1167_v29 }
  0x14   :  { %1070 = vmatmul.mubr.msk.f32.gmra.mrb[4].mxu1 %vm29_vm0, %v22_v39  ;;  %1195 = vmatprep.subr.bf16.mxu1 %v1299_v7 }
  0x15   :  { %1124 = vmatmul.mubr.msk.f32.vlgmr.msra.gmra.mrb[0].mxu0 %vm29_vm0, %v955_v40  ;;  %1072 = vmatprep.mubr.msk.f32.mxu1 %vm29_vm0, %v23_v41 }
  0x16   :  { %8 = vsyncpa [#allocation4], 0  ;;  %1190 = vmatpush3.bf16.msra.mxu0 %v1187_v36  ;;  %1126 = vmatprep.mubr.msk.f32.mxu0 %vm29_vm0, %v956_v42  ;;  %v957_v45 = vld [vmem:[%s1528_s0 + $0x51] sm:$0xff]  ;;  %v915_v48 = vld [vmem:[%s1528_s0 + $0x20] sm:$0xff] }
  0x17   :  { %v914_v46 = vld [vmem:[%s1528_s0 + $0x18] sm:$0xff]  ;;  %1192 = vmatprep.subr.bf16.mxu0 %v1191_v43  ;;  %v916_v50 = vld [vmem:[%s1528_s0 + $0x60] sm:$0xff]  ;;  %v917_v52 = vld [vmem:[%s1528_s0 + $0x68] sm:$0xff] }
  0x18   :  { %v958_v47 = vld [vmem:[%s1528_s0 + $0x91] sm:$0xff]  ;;  %1073 = vmatmul.mubr.msk.f32.gmra.mrb[6].mxu1 %vm29_vm0, %v24_v44  ;;  %v959_v49 = vld [vmem:[%s1528_s0 + $0x99] sm:$0xff]  ;;  %v961_v53 = vld [vmem:[%s1528_s0 + $0xe1] sm:$0xff] }
  0x19   :  { %1127 = vmatmul.mubr.msk.f32.gmra.mrb[2].mxu0 %vm29_vm0, %v957_v45  ;;  %1083 = vmatprep.mubr.msk.f32.mxu1 %vm29_vm0, %v914_v46  ;;  %v960_v51 = vld [vmem:[%s1528_s0 + $0xd9] sm:$0xff]  ;;  %v918_v54 = vld [vmem:[%s1528_s0 + $0xa8] sm:$0xff]  ;;  %v919_v56 = vld [vmem:[%s1528_s0 + $0xb0] sm:$0xff] }
  0x1a   :  { %1129 = vmatprep.mubr.msk.f32.mxu0 %vm29_vm0, %v958_v47  ;;  %1194 = vmatpush3.bf16.msra.mxu0 %v1191_v43  ;;  %v974_v55 = vld [vmem:[%s1528_s0 + $0x19] sm:$0xff]  ;;  %v975_v57 = vld [vmem:[%s1528_s0 + $0x21] sm:$0xff]  ;;  %v920_v58 = vld [vmem:[%s1528_s0 + $0xf0] sm:$0xff] }
  0x1b   :  { %v976_v59 = vld [vmem:[%s1528_s0 + $0x61] sm:$0xff]  ;;  %v921_v60 = vld [vmem:[%s1528_s0 + $0xf8] sm:$0xff]  ;;  %v977_v61 = vld [vmem:[%s1528_s0 + $0x69] sm:$0xff] }
  0x1c   :  { %1084 = vmatmul.mubr.msk.f32.vlgmr.msra.gmra.mrb[0].mxu1 %vm29_vm0, %v915_v48  ;;  %v938_v62 = vld [vmem:[%s1528_s0 + $0xc0] sm:$0xff]  ;;  %v978_v63 = vld [vmem:[%s1528_s0 + $0xa9] sm:$0xff]  ;;  %v979_v1 = vld [vmem:[%s1528_s0 + $0xb1] sm:$0xff] }
  0x1d   :  { %1130 = vmatmul.mubr.msk.f32.gmra.mrb[4].mxu0 %vm29_vm0, %v959_v49  ;;  %1197 = vmatpush3.bf16.msra.mxu1 %v1299_v7  ;;  %v939_v0 = vld [vmem:[%s1528_s0 + $0xc8] sm:$0xff]  ;;  %v980_v3 = vld [vmem:[%s1528_s0 + $0xf1] sm:$0xff]  ;;  %v981_v5 = vld [vmem:[%s1528_s0 + $0xf9] sm:$0xff] }
  0x1e   :  { %1086 = vmatprep.mubr.msk.f32.mxu1 %vm29_vm0, %v916_v50  ;;  %1132 = vmatprep.mubr.msk.f32.mxu0 %vm29_vm0, %v960_v51  ;;  %v940_v2 = vld [vmem:[%s1528_s0 + $0x108] sm:$0xff]  ;;  %v941_v4 = vld [vmem:[%s1528_s0 + $0x110] sm:$0xff]  ;;  %v994_v11 = vld [vmem:[%s1530_s2] ss:$0 sm:$0xff]  ;;  %s1258_s0 = smov [#allocation3]  }
  0x1f   :  { %1196 = vmatprep.subr.bf16.mxu1 %v1310_v12  ;;  %s891_s2 = sshll.u32 %s1258_s0, 4  ;;  %s892_s2 = int_to_ptr.vmem [resolvable:$true] %s891_s2 }
  0x20   :  { %1087 = vmatmul.mubr.msk.f32.gmra.mrb[2].mxu1 %vm29_vm0, %v917_v52  ;;  %s1234_s1 = scalar_lea.vmem %s892_s2, 1024  ;;  %p1239_p1 = scmp.lt.s32.totalorder %s892_s2, %s892_s2 }
  0x21   :  { %1133 = vmatmul.mubr.msk.f32.gmra.mrb[6].mxu0 %vm29_vm0, %v961_v53  ;;  %1089 = vmatprep.mubr.msk.f32.mxu1 %vm29_vm0, %v918_v54  ;;  %p1235_p0 = scmp.ne.s32.totalorder %s892_s2, %s1234_s1  ;;  %p1240_p2 = scmp.lt.s32.totalorder %s1234_s1, %s1234_s1 }
  0x22   :  { %1143 = vmatprep.mubr.msk.f32.mxu0 %vm29_vm0, %v974_v55  ;;  %1198 = vmatpush3.bf16.msra.mxu1 %v1310_v12 }
  0x23   :  { %p1241_p3 = por %p1240_p2, %p1239_p1 }
  0x24   :  { %1090 = vmatmul.mubr.msk.f32.gmra.mrb[4].mxu1 %vm29_vm0, %v919_v56 }
  0x25   :  { %1144 = vmatmul.mubr.msk.f32.vlgmr.msra.gmra.mrb[0].mxu0 %vm29_vm0, %v975_v57  ;;  %1092 = vmatprep.mubr.msk.f32.mxu1 %vm29_vm0, %v920_v58  ;;  %p1242_p4 = pnand %p1241_p3, %p1235_p0 }
  0x26   :  { %1146 = vmatprep.mubr.msk.f32.mxu0 %vm29_vm0, %v976_v59 }
  0x28   :  { %1093 = vmatmul.mubr.msk.f32.gmra.mrb[6].mxu1 %vm29_vm0, %v921_v60 }
  0x29   :  { %1147 = vmatmul.mubr.msk.f32.gmra.mrb[2].mxu0 %vm29_vm0, %v977_v61  ;;  %1109 = vmatprep.mubr.msk.f32.mxu1 %vm29_vm0, %v938_v62 }
  0x2a   :  { %1149 = vmatprep.mubr.msk.f32.mxu0 %vm29_vm0, %v978_v63 }
  0x2c   :  { %1110 = vmatmul.mubr.msk.f32.vlgmr.msra.gmra.mrb[4].mxu1 %vm29_vm0, %v939_v0 }
  0x2d   :  { %1150 = vmatmul.mubr.msk.f32.gmra.mrb[4].mxu0 %vm29_vm0, %v979_v1  ;;  %1112 = vmatprep.mubr.msk.f32.mxu1 %vm29_vm0, %v940_v2 }
  0x2e   :  { %1152 = vmatprep.mubr.msk.f32.mxu0 %vm29_vm0, %v980_v3 }
  0x30   :  { %1113 = vmatmul.mubr.msk.f32.gmra.mrb[6].mxu1 %vm29_vm0, %v941_v4 }
  0x31   :  { %1153 = vmatmul.mubr.msk.f32.gmra.mrb[6].mxu0 %vm29_vm0, %v981_v5 }
  0xef   :  { %v1085_v6 = vpop.f32.mrb[0].mxu1 }
  0xf0   :  { %v272_v7 = vpop.f32.mrb[1].mxu1 }
  0xf3   :  { %v1088_v8 = vpop.f32.mrb[2].mxu1 }
  0xf4   :  { %v282_v9 = vpop.f32.mrb[3].mxu1 }
  0xf8   :  { %v1145_v10 = vpop.f32.mrb[0].mxu0 }
  0xf9   :  { %v1199_v12 = vadd.f32 %v1145_v10, %v1085_v6  ;;  %v776_v13 = vpop.f32.mrb[1].mxu0 }
  0xfa   :  { %v1200_v14 = vadd.f32 %v776_v13, %v272_v7 }
  0xfb   :  { %v855_v15 = vadd.f32 %v1199_v12, %v994_v11 }
  0xfc   :  { %v854_v16 = vadd.f32 %v1200_v14, %v994_v11  ;;  %v1148_v17 = vpop.f32.mrb[2].mxu0 }
  0xfd   :  { %v863_v18 = vmul.f32 0.1, %v855_v15  ;;  %v1201_v19 = vadd.f32 %v1148_v17, %v1088_v8  ;;  %v786_v20 = vpop.f32.mrb[3].mxu0 }
  0xfe   :  { %v862_v21 = vmul.f32 0.1, %v854_v16  ;;  %v1202_v22 = vadd.f32 %v786_v20, %v282_v9 }
  0xff   :  { %v871_v23 = vmax.f32 %v855_v15, %v863_v18  ;;  %v857_v24 = vadd.f32 %v1201_v19, %v994_v11  ;;  %v1111_v25 = vpop.f32.mrb[4].mxu1 }
 0x100   :  { %v870_v26 = vmax.f32 %v854_v16, %v862_v21  ;;  %v856_v27 = vadd.f32 %v1202_v22, %v994_v11  ;;  %v1151_v28 = vpop.f32.mrb[4].mxu0  ;;  %v460_v29 = vpop.f32.mrb[5].mxu1 }
 0x101   :  { %879 = vst [vmem:[#allocation3 + $0x8] sm:$0xff] %v871_v23  ;;  %v865_v30 = vmul.f32 0.1, %v857_v24  ;;  %v1203_v31 = vadd.f32 %v1151_v28, %v1111_v25  ;;  %v796_v32 = vpop.f32.mrb[5].mxu0 }
 0x102   :  { %878 = vst [vmem:[#allocation3] sm:$0xff] %v870_v26  ;;  %v864_v33 = vmul.f32 0.1, %v856_v27  ;;  %v1204_v34 = vadd.f32 %v796_v32, %v460_v29 }
 0x103   :  { %v873_v35 = vmax.f32 %v857_v24, %v865_v30  ;;  %v859_v36 = vadd.f32 %v1203_v31, %v994_v11  ;;  %v1114_v37 = vpop.f32.mrb[6].mxu1 }
 0x104   :  { %v872_v38 = vmax.f32 %v856_v27, %v864_v33  ;;  %v858_v39 = vadd.f32 %v1204_v34, %v994_v11  ;;  %v1154_v40 = vpop.f32.mrb[6].mxu0  ;;  %v470_v41 = vpop.f32.mrb[7].mxu1 }
 0x105   :  { %881 = vst [vmem:[#allocation3 + $0x18] sm:$0xff] %v873_v35  ;;  %v867_v42 = vmul.f32 0.1, %v859_v36  ;;  %v1205_v43 = vadd.f32 %v1154_v40, %v1114_v37  ;;  %v806_v44 = vpop.f32.mrb[7].mxu0 }
 0x106   :  { %880 = vst [vmem:[#allocation3 + $0x10] sm:$0xff] %v872_v38  ;;  %v866_v45 = vmul.f32 0.1, %v858_v39  ;;  %v1206_v46 = vadd.f32 %v806_v44, %v470_v41 }
 0x107   :  { %v875_v47 = vmax.f32 %v859_v36, %v867_v42  ;;  %v861_v48 = vadd.f32 %v1205_v43, %v994_v11 }
 0x108   :  { %v874_v49 = vmax.f32 %v858_v39, %v866_v45  ;;  %v860_v50 = vadd.f32 %v1206_v46, %v994_v11 }
 0x109   :  { %883 = vst [vmem:[#allocation3 + $0x28] sm:$0xff] %v875_v47  ;;  %v869_v51 = vmul.f32 0.1, %v861_v48 }
 0x10a   :  { %882 = vst [vmem:[#allocation3 + $0x20] sm:$0xff] %v874_v49  ;;  %v868_v52 = vmul.f32 0.1, %v860_v50 }
 0x10b   :  { %v877_v53 = vmax.f32 %v861_v48, %v869_v51 }
 0x10c   :  { %v876_v54 = vmax.f32 %v860_v50, %v868_v52 }
 0x10d   :  { %885 = vst [vmem:[#allocation3 + $0x38] sm:$0xff] %v877_v53 }
 0x10e   :  { %884 = vst [vmem:[#allocation3 + $0x30] sm:$0xff] %v876_v54 }
 0x10f   :  { %1245 = shalt.err (!%p1242_p4)
}
 0x110   :  { %s1246_s26 = scalar_lea.hbm %s1531_s3, 1024 }
 0x111   :  { %p1247_p5 = scmp.ne.s32.totalorder %s1531_s3, %s1246_s26  ;;  %p1250_p6 = scmp.lt.u32.totalorder %s1246_s26, %s1531_s3 }
 0x113   :  { %p1252_p7 = pnand %p1250_p6, %p1247_p5 }
 0x115   :  { %1255 = shalt.err (!%p1252_p7)
}
 0x116   :  { %s1259_s4 = smov 128   ;;  %s1260_s5 = smov 8  }
 0x117   :  { %897 = dma.vmem_to_hbm [thread:$0]  %s892_s2, 1024, %s1531_s3, [#allocation4], %s1259_s4, %s1259_s4, %s1260_s5  }
 0x118   :  { %1256 = dma.done.wait [#allocation4], 1024  }
 0x119   :  { %1257 = vsyncadd [#allocation4], 4294966272 }
 0x11a   :  { %901 = vsyncpa [#allocation4], 1 }

</bundles_post_ra>
